<compile_context>
chip_gen: v5e
topology: v5e:2x2
jax: 0.10.0
libtpu: 0.0.40
codegen_flags: <defaults>
</compile_context>

<pallas_src>
import math

import jax
import jax.numpy as jnp
from jax.experimental import pallas as pl

# ----------------------- synthetic config (small shapes) -----------------------
BS = 2
TLEN = 8
NJOINTS = 22                      # SMPL body joints (head index 15 exists)
NFEATS = NJOINTS * 6              # 132  (6D rotation per joint)
NF_PAD = 256                      # lane-padded feature width (multiple of 128)
COND_DIM = 3 * 6 + 3 * 3 + 3 * 3 + 3 * 3   # joints [15,18,19] of poses/angular/jpos/linear = 45
TEMB_DIM = 32
CTX_DIM = COND_DIM + TEMB_DIM     # 77   (condition || timestep embedding)
CTX_PAD = 128                     # lane/K-padded context width
HIDDEN = 128
NUM_STEPS = 1000                  # DDPMScheduler num_train_timesteps

M = BS * TLEN                     # rows fed to the MLP (16, multiple of 8)
NROT = M * NJOINTS                # rotations per forward (352)
NROT2 = 2 * NROT                  # pred + gt rotations batched along lanes (704)
NROT2_PAD = 768                   # lane-padded (multiple of 128)


# ------------- kernel A: q-sample + denoiser MLP + simple-loss SSE epilogue -------------
def diffusion_mlp_kernel(a_ref, s_ref, x_ref, noise_ref, ctx_ref,
                         w1x_ref, w1c_ref, b1_ref, w2_ref, b2_ref,
                         pred_ref, sse_ref):
    """Fused DDPM q-sample + 2-layer conditional denoiser + simple-loss SSE.

    All f32, single whole-array invocation (no grid):
      a/s        : (M, 1)        sqrt(ac[t]) / sqrt(1-ac[t]) per row
      x, noise   : (M, NF_PAD)   poses zero-padded 132 -> 256 lanes
      ctx        : (M, CTX_PAD)  [condition(45) || timestep-emb(32)] zero-padded to 128
      w1x, w1c   : first-layer weight blocks (padded rows are zero)
      w2, b2     : second layer, output zero-padded 132 -> 256 lanes
      pred       : (M, NF_PAD)   lane-dense output (unmasked store)
      sse        : (1, NF_PAD)   per-lane partial sums of (pred - x)^2
    """
    x = x_ref[...]
    # DDPM q-sample: x_t = sqrt(ac[t]) * x + sqrt(1-ac[t]) * noise  (per-row scales)
    x_t = a_ref[...] * x + s_ref[...] * noise_ref[...]
    # input concat replaced by two accumulated MXU dots against pre-split weights
    h = (jnp.dot(x_t, w1x_ref[...], preferred_element_type=jnp.float32)
         + jnp.dot(ctx_ref[...], w1c_ref[...], preferred_element_type=jnp.float32)
         + b1_ref[...])
    h = jax.nn.gelu(h)            # tanh-approx GELU (EUP-friendly)
    pred = jnp.dot(h, w2_ref[...], preferred_element_type=jnp.float32) + b2_ref[...]
    pred_ref[...] = pred
    # simple-loss SSE while pred is still VMEM-resident; padded lanes are 0 on both sides
    d = pred - x
    sse_ref[...] = jnp.sum(d * d, axis=0, keepdims=True)


# ------------- kernel B: batched 6D rotation -> (cos, sin, skew) precursors -------------
def rot6d_kernel(r_ref, o_ref):
    """Gram-Schmidt + cross + angle precursors, prediction and ground truth batched
    side-by-side along the lane axis.

    r_ref : (6, NROT2_PAD)  rows = (a1x, a1y, a1z, a2x, a2y, a2z);
                            lanes [0:NROT] = prediction, [NROT:2*NROT] = ground truth.
    o_ref : (5, NROT2_PAD)  rows = (cos, sin, sx, sy, sz).
    """
    eps = 1e-8
    a1x = r_ref[0:1, :]
    a1y = r_ref[1:2, :]
    a1z = r_ref[2:3, :]
    a2x = r_ref[3:4, :]
    a2y = r_ref[4:5, :]
    a2z = r_ref[5:6, :]
    # explicit 3-term adds (VPU) instead of cross-sublane reductions (XLU)
    inv1 = jax.lax.rsqrt(a1x * a1x + a1y * a1y + a1z * a1z + eps)
    b1x, b1y, b1z = a1x * inv1, a1y * inv1, a1z * inv1
    d = b1x * a2x + b1y * a2y + b1z * a2z
    u2x, u2y, u2z = a2x - d * b1x, a2y - d * b1y, a2z - d * b1z
    inv2 = jax.lax.rsqrt(u2x * u2x + u2y * u2y + u2z * u2z + eps)
    b2x, b2y, b2z = u2x * inv2, u2y * inv2, u2z * inv2
    b3x = b1y * b2z - b1z * b2y
    b3y = b1z * b2x - b1x * b2z
    b3z = b1x * b2y - b1y * b2x
    cos_t = jnp.clip((b1x + b2y + b3z - 1.0) * 0.5, -1.0, 1.0)
    sx = b3y - b2z            # R[2,1] - R[1,2]   (rows of R are b1, b2, b3)
    sy = b1z - b3x            # R[0,2] - R[2,0]
    sz = b2x - b1y            # R[1,0] - R[0,1]
    sin_t = 0.5 * jnp.sqrt(sx * sx + sy * sy + sz * sz)
    # write rows directly (no sublane-shuffle concatenate before the store)
    o_ref[0:1, :] = cos_t
    o_ref[1:2, :] = sin_t
    o_ref[2:3, :] = sx
    o_ref[3:4, :] = sy
    o_ref[4:5, :] = sz


# ----------------------- plain-JAX glue -----------------------
def get_condition(data, head_only=False):
    bs, tlen = data['poses'].shape[:2]
    idx = jnp.array([15] if head_only else [15, 18, 19])
    parts = [data[k][:, :, idx].reshape(bs, tlen, -1)
             for k in ('poses', 'angular', 'jpos', 'linear')]
    return jnp.concatenate(parts, axis=-1)


def timestep_embedding(t, dim):
    half = dim // 2
    freqs = jnp.exp(-jnp.log(10000.0) * jnp.arange(half, dtype=jnp.float32) / half)
    args = t.astype(jnp.float32)[:, None] * freqs[None, :]
    return jnp.concatenate([jnp.sin(args), jnp.cos(args)], axis=-1)


class GaussianDiffusionPallas:
    def __init__(self, key):
        k1, k2, k3 = jax.random.split(key, 3)
        din = NFEATS + CTX_DIM
        sc1 = 1.0 / math.sqrt(din)
        # First-layer weights pre-split by input stream; K dims padded with zero rows
        # so the lane-padded x_t / ctx blocks dot against aligned K.
        self.w1x = jnp.zeros((NF_PAD, HIDDEN), jnp.float32).at[:NFEATS].set(
            jax.random.normal(k1, (NFEATS, HIDDEN), jnp.float32) * sc1)
        self.w1c = jnp.zeros((CTX_PAD, HIDDEN), jnp.float32).at[:CTX_DIM].set(
            jax.random.normal(k2, (CTX_DIM, HIDDEN), jnp.float32) * sc1)
        self.b1 = jnp.zeros((1, HIDDEN), jnp.float32)
        # Second layer: output lane-padded 132 -> 256 with zero columns (unmasked vst).
        self.w2 = jnp.zeros((HIDDEN, NF_PAD), jnp.float32).at[:, :NFEATS].set(
            jax.random.normal(k3, (HIDDEN, NFEATS), jnp.float32) / math.sqrt(HIDDEN))
        self.b2 = jnp.zeros((1, NF_PAD), jnp.float32)
        # DDPM linear beta schedule (diffusers defaults: 1e-4 .. 0.02, 1000 steps)
        betas = jnp.linspace(1e-4, 0.02, NUM_STEPS, dtype=jnp.float32)
        ac = jnp.cumprod(1.0 - betas)
        self.sqrt_ac = jnp.sqrt(ac)
        self.sqrt_1mac = jnp.sqrt(1.0 - ac)

    def _denoise_and_sse(self, x_pad, noise_pad, ctx, a_col, s_col):
        return pl.pallas_call(
            diffusion_mlp_kernel,
            out_shape=(jax.ShapeDtypeStruct((M, NF_PAD), jnp.float32),
                       jax.ShapeDtypeStruct((1, NF_PAD), jnp.float32)),
        )(a_col, s_col, x_pad, noise_pad, ctx,
          self.w1x, self.w1c, self.b1, self.w2, self.b2)

    def forward(self, data, lambdas, rng):
        bs, tlen = data['jpos'].shape[:2]
        cond = get_condition(data).reshape(bs * tlen, COND_DIM)
        x = data['poses'].reshape(bs * tlen, NFEATS)
        x_pad = jnp.pad(x, ((0, 0), (0, NF_PAD - NFEATS)))

        kt, kn = jax.random.split(rng)
        t = jax.random.randint(kt, (bs,), 0, NUM_STEPS)
        # Noise drawn at padded width; the padded columns never reach the loss or the
        # MLP (their w1x rows are zero).
        noise_pad = jax.random.normal(kn, (bs * tlen, NF_PAD), jnp.float32)
        a_col = jnp.repeat(self.sqrt_ac[t], tlen)[:, None]           # (M, 1)
        s_col = jnp.repeat(self.sqrt_1mac[t], tlen)[:, None]         # (M, 1)
        temb = jnp.repeat(timestep_embedding(t, TEMB_DIM), tlen, axis=0)    # (M, 32)
        # condition || timestep embedding, lane/K-padded to 128 for one aligned MXU dot
        ctx = jnp.pad(jnp.concatenate([cond, temb], axis=-1),
                      ((0, 0), (0, CTX_PAD - CTX_DIM)))               # (M, 128)
        # TODO(synk): data['mask'] (key_padding_mask) is unused — the real denoiser is a
        # transformer with attention masking; the synthetic MLP stands in.

        pred, sse_row = self._denoise_and_sse(x_pad, noise_pad, ctx, a_col, s_col)

        lam_simple, lam_geometric = lambdas
        mse_simple = jnp.sum(sse_row) / float(M * NFEATS)

        # ---- geometric loss: rot6d for pred + gt batched along lanes in one kernel ----
        # TODO(synk): the gt half depends only on ground-truth poses and could be cached
        # across training steps of the same batch to halve this kernel's work.
        stacked = jnp.concatenate([pred, x_pad], axis=0)               # (2M, NF_PAD)
        comp = stacked[:, :NFEATS].reshape(NROT2, 6).T                 # (6, 704) comp-major
        comp = jnp.pad(comp, ((0, 0), (0, NROT2_PAD - NROT2)))         # (6, 768)
        geo = pl.pallas_call(
            rot6d_kernel,
            out_shape=jax.ShapeDtypeStruct((5, NROT2_PAD), jnp.float32),
        )(comp)

        # TODO(synk): inverse trig (atan2) kept in XLA glue; all other axis-angle math
        # (Gram-Schmidt, cross, clip, sqrt) runs inside rot6d_kernel.
        cos_t, sin_t, sx, sy, sz = geo[0], geo[1], geo[2], geo[3], geo[4]
        ang = jnp.arctan2(sin_t, cos_t)
        # TODO(synk): near angle==pi the skew vector vanishes and the 0.5 fallback
        # under-estimates the rotation magnitude (degenerate-case caveat).
        fac = jnp.where(sin_t > 1e-6, ang / (2.0 * sin_t + 1e-12), 0.5)
        aa = jnp.stack([fac * sx, fac * sy, fac * sz], axis=0)          # (3, 768)
        # TODO(synk): SMPLH forward kinematics (smpl(aa)[1][:, :22]) is an external body
        # model; geometric loss is computed on axis-angles directly.
        diff = aa[:, :NROT] - aa[:, NROT:NROT2]                         # pred - gt
        mse_geo = jnp.sum(diff * diff) / float(3 * NROT)

        return lam_simple * mse_simple + lam_geometric * mse_geo


if __name__ == "__main__":
    key = jax.random.PRNGKey(0)
    kmodel, kdata, krun = jax.random.split(key, 3)
    model = GaussianDiffusionPallas(kmodel)

    kd = jax.random.split(kdata, 4)
    data = {
        'poses':   jax.random.normal(kd[0], (BS, TLEN, NJOINTS, 6), jnp.float32),
        'angular': jax.random.normal(kd[1], (BS, TLEN, NJOINTS, 3), jnp.float32),
        'jpos':    jax.random.normal(kd[2], (BS, TLEN, NJOINTS, 3), jnp.float32),
        'linear':  jax.random.normal(kd[3], (BS, TLEN, NJOINTS, 3), jnp.float32),
        'mask':    jnp.zeros((BS, TLEN), dtype=bool),
        'scene':   None,   # scene_encoder disabled (optional submodule)
    }

    step = jax.jit(lambda d, r: model.forward(d, (1.0, 0.1), r))
    loss = step(data, krun)
    jax.block_until_ready(loss)
    assert loss.shape == () and bool(jnp.isfinite(loss))
    print("KERNEL_OK")
</pallas_src>

<mosaic_0001>
module attributes {stable_mosaic.version = 11 : i64} {
  func.func @diffusion_mlp_kernel(%arg0: memref<16x1xf32, #tpu.memory_space<vmem>>, %arg1: memref<16x1xf32, #tpu.memory_space<vmem>>, %arg2: memref<16x256xf32, #tpu.memory_space<vmem>>, %arg3: memref<16x256xf32, #tpu.memory_space<vmem>>, %arg4: memref<16x128xf32, #tpu.memory_space<vmem>>, %arg5: memref<256x128xf32, #tpu.memory_space<vmem>>, %arg6: memref<128x128xf32, #tpu.memory_space<vmem>>, %arg7: memref<1x128xf32, #tpu.memory_space<vmem>>, %arg8: memref<128x256xf32, #tpu.memory_space<vmem>>, %arg9: memref<1x256xf32, #tpu.memory_space<vmem>>, %arg10: memref<16x256xf32, #tpu.memory_space<vmem>>, %arg11: memref<1x256xf32, #tpu.memory_space<vmem>>) attributes {dimension_semantics = [], scalar_prefetch = 0 : i64, scratch_operands = 0 : i64, tpu.core_type = #tpu.core_type<tc>} {
    %c0 = arith.constant 0 : index
    %c0_0 = arith.constant 0 : index
    %0 = vector.load %arg2[%c0, %c0_0] : memref<16x256xf32, #tpu.memory_space<vmem>>, vector<16x256xf32>
    %c0_1 = arith.constant 0 : index
    %c0_2 = arith.constant 0 : index
    %1 = vector.load %arg0[%c0_1, %c0_2] : memref<16x1xf32, #tpu.memory_space<vmem>>, vector<16x1xf32>
    %2 = vector.broadcast %1 : vector<16x1xf32> to vector<16x256xf32>
    %3 = arith.mulf %2, %0 : vector<16x256xf32>
    %c0_3 = arith.constant 0 : index
    %c0_4 = arith.constant 0 : index
    %4 = vector.load %arg1[%c0_3, %c0_4] : memref<16x1xf32, #tpu.memory_space<vmem>>, vector<16x1xf32>
    %c0_5 = arith.constant 0 : index
    %c0_6 = arith.constant 0 : index
    %5 = vector.load %arg3[%c0_5, %c0_6] : memref<16x256xf32, #tpu.memory_space<vmem>>, vector<16x256xf32>
    %6 = vector.broadcast %4 : vector<16x1xf32> to vector<16x256xf32>
    %7 = arith.mulf %6, %5 : vector<16x256xf32>
    %8 = arith.addf %3, %7 : vector<16x256xf32>
    %c0_7 = arith.constant 0 : index
    %c0_8 = arith.constant 0 : index
    %9 = vector.load %arg5[%c0_7, %c0_8] : memref<256x128xf32, #tpu.memory_space<vmem>>, vector<256x128xf32>
    %cst = arith.constant dense<0.000000e+00> : vector<16x128xf32>
    %10 = tpu.matmul %8, %9, %cst {dimension_numbers = #tpu.dot_dimension_numbers<[1], [0], [0], [1], [0, 0, 1, 1], [], []>} : vector<16x256xf32>, vector<256x128xf32>, vector<16x128xf32> -> vector<16x128xf32>
    %c0_9 = arith.constant 0 : index
    %c0_10 = arith.constant 0 : index
    %11 = vector.load %arg4[%c0_9, %c0_10] : memref<16x128xf32, #tpu.memory_space<vmem>>, vector<16x128xf32>
    %c0_11 = arith.constant 0 : index
    %c0_12 = arith.constant 0 : index
    %12 = vector.load %arg6[%c0_11, %c0_12] : memref<128x128xf32, #tpu.memory_space<vmem>>, vector<128x128xf32>
    %cst_13 = arith.constant dense<0.000000e+00> : vector<16x128xf32>
    %13 = tpu.matmul %11, %12, %cst_13 {dimension_numbers = #tpu.dot_dimension_numbers<[1], [0], [0], [1], [0, 0, 1, 1], [], []>} : vector<16x128xf32>, vector<128x128xf32>, vector<16x128xf32> -> vector<16x128xf32>
    %14 = arith.addf %10, %13 : vector<16x128xf32>
    %c0_14 = arith.constant 0 : index
    %c0_15 = arith.constant 0 : index
    %15 = vector.load %arg7[%c0_14, %c0_15] : memref<1x128xf32, #tpu.memory_space<vmem>>, vector<1x128xf32>
    %16 = vector.broadcast %15 : vector<1x128xf32> to vector<16x128xf32>
    %17 = arith.addf %14, %16 : vector<16x128xf32>
    %18 = arith.mulf %17, %17 : vector<16x128xf32>
    %19 = arith.mulf %17, %18 : vector<16x128xf32>
    %cst_16 = arith.constant 4.471500e-02 : f32
    %20 = vector.broadcast %cst_16 : f32 to vector<16x128xf32>
    %21 = arith.mulf %20, %19 : vector<16x128xf32>
    %22 = arith.addf %17, %21 : vector<16x128xf32>
    %cst_17 = arith.constant 0.797884583 : f32
    %23 = vector.broadcast %cst_17 : f32 to vector<16x128xf32>
    %24 = arith.mulf %23, %22 : vector<16x128xf32>
    %25 = math.tanh %24 : vector<16x128xf32>
    %cst_18 = arith.constant 1.000000e+00 : f32
    %26 = vector.broadcast %cst_18 : f32 to vector<16x128xf32>
    %27 = arith.addf %26, %25 : vector<16x128xf32>
    %cst_19 = arith.constant 5.000000e-01 : f32
    %28 = vector.broadcast %cst_19 : f32 to vector<16x128xf32>
    %29 = arith.mulf %28, %27 : vector<16x128xf32>
    %30 = arith.mulf %17, %29 : vector<16x128xf32>
    %c0_20 = arith.constant 0 : index
    %c0_21 = arith.constant 0 : index
    %31 = vector.load %arg8[%c0_20, %c0_21] : memref<128x256xf32, #tpu.memory_space<vmem>>, vector<128x256xf32>
    %cst_22 = arith.constant dense<0.000000e+00> : vector<16x256xf32>
    %32 = tpu.matmul %30, %31, %cst_22 {dimension_numbers = #tpu.dot_dimension_numbers<[1], [0], [0], [1], [0, 0, 1, 1], [], []>} : vector<16x128xf32>, vector<128x256xf32>, vector<16x256xf32> -> vector<16x256xf32>
    %c0_23 = arith.constant 0 : index
    %c0_24 = arith.constant 0 : index
    %33 = vector.load %arg9[%c0_23, %c0_24] : memref<1x256xf32, #tpu.memory_space<vmem>>, vector<1x256xf32>
    %34 = vector.broadcast %33 : vector<1x256xf32> to vector<16x256xf32>
    %35 = arith.addf %32, %34 : vector<16x256xf32>
    %c0_25 = arith.constant 0 : index
    %c0_26 = arith.constant 0 : index
    %36 = vector.load %arg10[%c0_25, %c0_26] : memref<16x256xf32, #tpu.memory_space<vmem>>, vector<16x256xf32>
    tpu.vector_store %arg10[%c0_25, %c0_26], %35 {strides = array<i32>} : memref<16x256xf32, #tpu.memory_space<vmem>>, vector<16x256xf32>,
    %37 = arith.subf %35, %0 : vector<16x256xf32>
    %38 = arith.mulf %37, %37 : vector<16x256xf32>
    %cst_27 = arith.constant dense<0.000000e+00> : vector<256xf32>
    %39 = vector.multi_reduction <add>, %38, %cst_27 [0] : vector<16x256xf32> to vector<256xf32>
    %40 = vector.shape_cast %39 : vector<256xf32> to vector<1x256xf32>
    %c0_28 = arith.constant 0 : index
    %c0_29 = arith.constant 0 : index
    %41 = vector.load %arg11[%c0_28, %c0_29] : memref<1x256xf32, #tpu.memory_space<vmem>>, vector<1x256xf32>
    tpu.vector_store %arg11[%c0_28, %c0_29], %40 {strides = array<i32>} : memref<1x256xf32, #tpu.memory_space<vmem>>, vector<1x256xf32>,
    return
  }
}

module attributes {stable_mosaic.version = 11 : i64} {
  func.func @rot6d_kernel(%arg0: memref<6x768xf32, #tpu.memory_space<vmem>>, %arg1: memref<5x768xf32, #tpu.memory_space<vmem>>) attributes {dimension_semantics = [], scalar_prefetch = 0 : i64, scratch_operands = 0 : i64, tpu.core_type = #tpu.core_type<tc>} {
    %c0 = arith.constant 0 : index
    %c0_0 = arith.constant 0 : index
    %0 = vector.load %arg0[%c0, %c0_0] : memref<6x768xf32, #tpu.memory_space<vmem>>, vector<1x768xf32>
    %c1 = arith.constant 1 : index
    %c0_1 = arith.constant 0 : index
    %1 = vector.load %arg0[%c1, %c0_1] : memref<6x768xf32, #tpu.memory_space<vmem>>, vector<1x768xf32>
    %c2 = arith.constant 2 : index
    %c0_2 = arith.constant 0 : index
    %2 = vector.load %arg0[%c2, %c0_2] : memref<6x768xf32, #tpu.memory_space<vmem>>, vector<1x768xf32>
    %c3 = arith.constant 3 : index
    %c0_3 = arith.constant 0 : index
    %3 = vector.load %arg0[%c3, %c0_3] : memref<6x768xf32, #tpu.memory_space<vmem>>, vector<1x768xf32>
    %c4 = arith.constant 4 : index
    %c0_4 = arith.constant 0 : index
    %4 = vector.load %arg0[%c4, %c0_4] : memref<6x768xf32, #tpu.memory_space<vmem>>, vector<1x768xf32>
    %c5 = arith.constant 5 : index
    %c0_5 = arith.constant 0 : index
    %5 = vector.load %arg0[%c5, %c0_5] : memref<6x768xf32, #tpu.memory_space<vmem>>, vector<1x768xf32>
    %6 = arith.mulf %0, %0 : vector<1x768xf32>
    %7 = arith.mulf %1, %1 : vector<1x768xf32>
    %8 = arith.addf %6, %7 : vector<1x768xf32>
    %9 = arith.mulf %2, %2 : vector<1x768xf32>
    %10 = arith.addf %8, %9 : vector<1x768xf32>
    %cst = arith.constant 9.99999993E-9 : f32
    %11 = vector.broadcast %cst : f32 to vector<1x768xf32>
    %12 = arith.addf %10, %11 : vector<1x768xf32>
    %13 = math.rsqrt %12 : vector<1x768xf32>
    %14 = arith.mulf %0, %13 : vector<1x768xf32>
    %15 = arith.mulf %1, %13 : vector<1x768xf32>
    %16 = arith.mulf %2, %13 : vector<1x768xf32>
    %17 = arith.mulf %14, %3 : vector<1x768xf32>
    %18 = arith.mulf %15, %4 : vector<1x768xf32>
    %19 = arith.addf %17, %18 : vector<1x768xf32>
    %20 = arith.mulf %16, %5 : vector<1x768xf32>
    %21 = arith.addf %19, %20 : vector<1x768xf32>
    %22 = arith.mulf %21, %14 : vector<1x768xf32>
    %23 = arith.subf %3, %22 : vector<1x768xf32>
    %24 = arith.mulf %21, %15 : vector<1x768xf32>
    %25 = arith.subf %4, %24 : vector<1x768xf32>
    %26 = arith.mulf %21, %16 : vector<1x768xf32>
    %27 = arith.subf %5, %26 : vector<1x768xf32>
    %28 = arith.mulf %23, %23 : vector<1x768xf32>
    %29 = arith.mulf %25, %25 : vector<1x768xf32>
    %30 = arith.addf %28, %29 : vector<1x768xf32>
    %31 = arith.mulf %27, %27 : vector<1x768xf32>
    %32 = arith.addf %30, %31 : vector<1x768xf32>
    %cst_6 = arith.constant 9.99999993E-9 : f32
    %33 = vector.broadcast %cst_6 : f32 to vector<1x768xf32>
    %34 = arith.addf %32, %33 : vector<1x768xf32>
    %35 = math.rsqrt %34 : vector<1x768xf32>
    %36 = arith.mulf %23, %35 : vector<1x768xf32>
    %37 = arith.mulf %25, %35 : vector<1x768xf32>
    %38 = arith.mulf %27, %35 : vector<1x768xf32>
    %39 = arith.mulf %15, %38 : vector<1x768xf32>
    %40 = arith.mulf %16, %37 : vector<1x768xf32>
    %41 = arith.subf %39, %40 : vector<1x768xf32>
    %42 = arith.mulf %16, %36 : vector<1x768xf32>
    %43 = arith.mulf %14, %38 : vector<1x768xf32>
    %44 = arith.subf %42, %43 : vector<1x768xf32>
    %45 = arith.mulf %14, %37 : vector<1x768xf32>
    %46 = arith.mulf %15, %36 : vector<1x768xf32>
    %47 = arith.subf %45, %46 : vector<1x768xf32>
    %48 = arith.addf %14, %37 : vector<1x768xf32>
    %49 = arith.addf %48, %47 : vector<1x768xf32>
    %cst_7 = arith.constant 1.000000e+00 : f32
    %50 = vector.broadcast %cst_7 : f32 to vector<1x768xf32>
    %51 = arith.subf %49, %50 : vector<1x768xf32>
    %cst_8 = arith.constant 5.000000e-01 : f32
    %52 = vector.broadcast %cst_8 : f32 to vector<1x768xf32>
    %53 = arith.mulf %51, %52 : vector<1x768xf32>
    %cst_9 = arith.constant -1.000000e+00 : f32
    %cst_10 = arith.constant 1.000000e+00 : f32
    %54 = vector.broadcast %cst_9 : f32 to vector<1x768xf32>
    %55 = arith.maximumf %54, %53 : vector<1x768xf32>
    %56 = vector.broadcast %cst_10 : f32 to vector<1x768xf32>
    %57 = arith.minimumf %56, %55 : vector<1x768xf32>
    %58 = arith.subf %44, %38 : vector<1x768xf32>
    %59 = arith.subf %16, %41 : vector<1x768xf32>
    %60 = arith.subf %36, %15 : vector<1x768xf32>
    %61 = arith.mulf %58, %58 : vector<1x768xf32>
    %62 = arith.mulf %59, %59 : vector<1x768xf32>
    %63 = arith.addf %61, %62 : vector<1x768xf32>
    %64 = arith.mulf %60, %60 : vector<1x768xf32>
    %65 = arith.addf %63, %64 : vector<1x768xf32>
    %66 = math.sqrt %65 : vector<1x768xf32>
    %cst_11 = arith.constant 5.000000e-01 : f32
    %67 = vector.broadcast %cst_11 : f32 to vector<1x768xf32>
    %68 = arith.mulf %67, %66 : vector<1x768xf32>
    %c0_12 = arith.constant 0 : index
    %c0_13 = arith.constant 0 : index
    %69 = vector.load %arg1[%c0_12, %c0_13] : memref<5x768xf32, #tpu.memory_space<vmem>>, vector<1x768xf32>
    tpu.vector_store %arg1[%c0_12, %c0_13], %57 {strides = array<i32>} : memref<5x768xf32, #tpu.memory_space<vmem>>, vector<1x768xf32>,
    %c1_14 = arith.constant 1 : index
    %c0_15 = arith.constant 0 : index
    %70 = vector.load %arg1[%c1_14, %c0_15] : memref<5x768xf32, #tpu.memory_space<vmem>>, vector<1x768xf32>
    tpu.vector_store %arg1[%c1_14, %c0_15], %68 {strides = array<i32>} : memref<5x768xf32, #tpu.memory_space<vmem>>, vector<1x768xf32>,
    %c2_16 = arith.constant 2 : index
    %c0_17 = arith.constant 0 : index
    %71 = vector.load %arg1[%c2_16, %c0_17] : memref<5x768xf32, #tpu.memory_space<vmem>>, vector<1x768xf32>
    tpu.vector_store %arg1[%c2_16, %c0_17], %58 {strides = array<i32>} : memref<5x768xf32, #tpu.memory_space<vmem>>, vector<1x768xf32>,
    %c3_18 = arith.constant 3 : index
    %c0_19 = arith.constant 0 : index
    %72 = vector.load %arg1[%c3_18, %c0_19] : memref<5x768xf32, #tpu.memory_space<vmem>>, vector<1x768xf32>
    tpu.vector_store %arg1[%c3_18, %c0_19], %59 {strides = array<i32>} : memref<5x768xf32, #tpu.memory_space<vmem>>, vector<1x768xf32>,
    %c4_20 = arith.constant 4 : index
    %c0_21 = arith.constant 0 : index
    %73 = vector.load %arg1[%c4_20, %c0_21] : memref<5x768xf32, #tpu.memory_space<vmem>>, vector<1x768xf32>
    tpu.vector_store %arg1[%c4_20, %c0_21], %60 {strides = array<i32>} : memref<5x768xf32, #tpu.memory_space<vmem>>, vector<1x768xf32>,
    return
  }
}

</mosaic_0001>

<bundles_post_ra>
// kernel: _lambda_.3
= control target key start
LH: loop header
LB: loop body
LE: loop exit
PB: predicated region body
PF: predicated region fallthrough
CT: control target
= control target key end

     0   :  { %v116_v57 = vlaneseq  ;;  %s264_s0 = inlined_call_operand.vmem [shape: f32[6,768], index: 0, kind: input, shape index: {}]   ;;  %s265_s1 = inlined_call_operand.vmem [shape: f32[5,768], index: 1, kind: output, shape index: {}]  }
   0x1   :  { %v8_v0 = vld [vmem:[%s264_s0] ss:$8 sm:$0xf]  ;;  %v138_v3 = vld [vmem:[%s264_s0 + $0x1] ss:$8 sm:$0xf] }
   0x2   :  { %v9_v1 = vld [vmem:[%s264_s0] ss:$8 sm:$0x30]  ;;  %v139_v4 = vld [vmem:[%s264_s0 + $0x1] ss:$8 sm:$0x30] }
   0x3   :  { %v10_v2 = vor.u32 %v9_v1, %v8_v0  ;;  %v14_v5 = vor.u32 %v139_v4, %v138_v3  ;;  %v140_v6 = vld [vmem:[%s264_s0 + $0x2] ss:$8 sm:$0xf]  ;;  %v142_v18 = vld [vmem:[%s264_s0 + $0x3] ss:$8 sm:$0xf] }
   0x4   :  { %v141_v7 = vld [vmem:[%s264_s0 + $0x2] ss:$8 sm:$0x30]  ;;  %v143_v19 = vld [vmem:[%s264_s0 + $0x3] ss:$8 sm:$0x30] }
   0x5   :  { %v18_v8 = vor.u32 %v141_v7, %v140_v6  ;;  %v31_v9 = vmul.f32 %v10_v2, %v10_v2  ;;  %v32_v10 = vmul.f32 %v14_v5, %v14_v5  ;;  %v144_v20 = vld [vmem:[%s264_s0 + $0x4] ss:$8 sm:$0xf]  ;;  %v146_v23 = vld [vmem:[%s264_s0 + $0x5] ss:$8 sm:$0xf]  ;;  %v22_v27 = vor.u32 %v143_v19, %v142_v18 }
   0x6   :  { %v145_v22 = vld [vmem:[%s264_s0 + $0x4] ss:$8 sm:$0x30]  ;;  %v147_v24 = vld [vmem:[%s264_s0 + $0x5] ss:$8 sm:$0x30] }
   0x7   :  { %v34_v11 = vmul.f32 %v18_v8, %v18_v8  ;;  %v33_v12 = vadd.f32 %v32_v10, %v31_v9  ;;  %v26_v28 = vor.u32 %v145_v22, %v144_v20  ;;  %v30_v29 = vor.u32 %v147_v24, %v146_v23 }
   0x8   :  { %vm210_vm6 = vcmp.lt.s32.totalorder %v116_v57, 768 }
   0x9   :  { %v35_v13 = vadd.f32 %v34_v11, %v33_v12 }
   0xb   :  { %v36_v14 = vadd.f32 1e-08, %v35_v13 }
   0xd   :  { %158 = vrsqrt.f32 %v36_v14  ;;  %vm43_vm0 = vweird.f32 %v36_v14 }
  0x13   :  { %v159_v15 = vpop.eup %158 }
  0x14   :  { %v38_v16 = vmul.f32 %v159_v15, %v36_v14  ;;  %vm44_vm1 = vweird.f32 %v159_v15 }
  0x15   :  { %vm45_vm2 = vmor %vm43_vm0, %vm44_vm1 }
  0x16   :  { %v39_v17 = vmul.f32 %v159_v15, %v38_v16 }
  0x18   :  { %v40_v21 = vmul.f32 0.5, %v39_v17 }
  0x1a   :  { %v41_v25 = vsub.f32 1.5, %v40_v21 }
  0x1c   :  { %v42_v26 = vmul.f32 %v159_v15, %v41_v25 }
  0x1e   :  { %v46_v30 = vsel %vm45_vm2, %v159_v15, %v42_v26 }
  0x1f   :  { %v47_v31 = vmul.f32 %v46_v30, %v10_v2  ;;  %v48_v32 = vmul.f32 %v46_v30, %v14_v5  ;;  %v49_v33 = vmul.f32 %v46_v30, %v18_v8 }
  0x21   :  { %v50_v34 = vmul.f32 %v47_v31, %v22_v27  ;;  %v51_v35 = vmul.f32 %v48_v32, %v26_v28  ;;  %v53_v36 = vmul.f32 %v49_v33, %v30_v29 }
  0x23   :  { %v52_v37 = vadd.f32 %v51_v35, %v50_v34 }
  0x25   :  { %v54_v38 = vadd.f32 %v53_v36, %v52_v37 }
  0x27   :  { %v55_v39 = vmul.f32 %v54_v38, %v47_v31  ;;  %v57_v40 = vmul.f32 %v54_v38, %v48_v32  ;;  %v59_v41 = vmul.f32 %v54_v38, %v49_v33 }
  0x29   :  { %v56_v42 = vsub.f32 %v22_v27, %v55_v39  ;;  %v58_v43 = vsub.f32 %v26_v28, %v57_v40  ;;  %v60_v44 = vsub.f32 %v30_v29, %v59_v41 }
  0x2b   :  { %v61_v45 = vmul.f32 %v56_v42, %v56_v42  ;;  %v62_v46 = vmul.f32 %v58_v43, %v58_v43  ;;  %v64_v47 = vmul.f32 %v60_v44, %v60_v44 }
  0x2d   :  { %v63_v48 = vadd.f32 %v62_v46, %v61_v45 }
  0x2f   :  { %v65_v49 = vadd.f32 %v64_v47, %v63_v48 }
  0x31   :  { %v66_v50 = vadd.f32 1e-08, %v65_v49 }
  0x33   :  { %160 = vrsqrt.f32 %v66_v50  ;;  %vm73_vm3 = vweird.f32 %v66_v50 }
  0x39   :  { %v161_v51 = vpop.eup %160 }
  0x3a   :  { %v68_v52 = vmul.f32 %v161_v51, %v66_v50  ;;  %vm74_vm4 = vweird.f32 %v161_v51 }
  0x3b   :  { %vm75_vm5 = vmor %vm73_vm3, %vm74_vm4 }
  0x3c   :  { %v69_v53 = vmul.f32 %v161_v51, %v68_v52 }
  0x3e   :  { %v70_v54 = vmul.f32 0.5, %v69_v53 }
  0x40   :  { %v71_v55 = vsub.f32 1.5, %v70_v54 }
  0x42   :  { %v72_v56 = vmul.f32 %v161_v51, %v71_v55 }
  0x44   :  { %v76_v58 = vsel %vm75_vm5, %v161_v51, %v72_v56 }
  0x45   :  { %v77_v59 = vmul.f32 %v76_v58, %v56_v42  ;;  %v78_v60 = vmul.f32 %v76_v58, %v58_v43  ;;  %v79_v61 = vmul.f32 %v76_v58, %v60_v44 }
  0x47   :  { %v80_v63 = vmul.f32 %v79_v61, %v48_v32  ;;  %v81_v0 = vmul.f32 %v78_v60, %v49_v33  ;;  %v83_v1 = vmul.f32 %v77_v59, %v49_v33  ;;  %v84_v2 = vmul.f32 %v79_v61, %v47_v31 }
  0x48   :  { %v86_v3 = vmul.f32 %v78_v60, %v47_v31  ;;  %v87_v4 = vmul.f32 %v77_v59, %v48_v32  ;;  %v89_v5 = vadd.f32 %v78_v60, %v47_v31  ;;  %v97_v6 = vsub.f32 %v77_v59, %v48_v32 }
  0x49   :  { %v82_v7 = vsub.f32 %v80_v63, %v81_v0  ;;  %v85_v8 = vsub.f32 %v83_v1, %v84_v2 }
  0x4a   :  { %v88_v9 = vsub.f32 %v86_v3, %v87_v4  ;;  %156 = vst.msk [vmem:[%s265_s1 + $0x4] ss:$8 sm:$0xf] %vm210_vm6, %v97_v6  ;;  %v101_v15 = vmul.f32 %v97_v6, %v97_v6 }
  0x4b   :  { %v95_v10 = vsub.f32 %v85_v8, %v79_v61  ;;  %v96_v11 = vsub.f32 %v49_v33, %v82_v7  ;;  %157 = vst.msk [vmem:[%s265_s1 + $0x4] ss:$8 sm:$0x30] %vm210_vm6, %v97_v6 }
  0x4c   :  { %v90_v12 = vadd.f32 %v89_v5, %v88_v9 }
  0x4d   :  { %v98_v13 = vmul.f32 %v95_v10, %v95_v10  ;;  %v99_v14 = vmul.f32 %v96_v11, %v96_v11  ;;  %152 = vst.msk [vmem:[%s265_s1 + $0x2] ss:$8 sm:$0xf] %vm210_vm6, %v95_v10 }
  0x4e   :  { %v148_v16 = vadd.f32 -1.0, %v90_v12  ;;  %153 = vst.msk [vmem:[%s265_s1 + $0x2] ss:$8 sm:$0x30] %vm210_vm6, %v95_v10 }
  0x4f   :  { %v100_v17 = vadd.f32 %v99_v14, %v98_v13  ;;  %154 = vst.msk [vmem:[%s265_s1 + $0x3] ss:$8 sm:$0xf] %vm210_vm6, %v96_v11 }
  0x50   :  { %v92_v18 = vmul.f32 0.5, %v148_v16  ;;  %155 = vst.msk [vmem:[%s265_s1 + $0x3] ss:$8 sm:$0x30] %vm210_vm6, %v96_v11 }
  0x51   :  { %v102_v19 = vadd.f32 %v101_v15, %v100_v17 }
  0x52   :  { %v149_v20 = vclamps-f32 %v92_v18, 1.0 }
  0x53   :  { %162 = vrsqrt.f32 %v102_v19  ;;  %vm110_vm7 = vcmp.eq.f32.partialorder %v102_v19, inf  ;;  %v113_v27 = vand.u32 2147483648, %v102_v19  ;;  %vm112_vm8 = vcmp.eq.f32.partialorder %v102_v19, 0.0 }
  0x54   :  { %120 = vst.msk [vmem:[%s265_s1] ss:$8 sm:$0xf] %vm210_vm6, %v149_v20 }
  0x55   :  { %121 = vst.msk [vmem:[%s265_s1] ss:$8 sm:$0x30] %vm210_vm6, %v149_v20 }
  0x59   :  { %v163_v21 = vpop.eup %162 }
  0x5a   :  { %v104_v22 = vmul.f32 %v163_v21, %v102_v19 }
  0x5c   :  { %v105_v23 = vmul.f32 %v163_v21, %v104_v22 }
  0x5e   :  { %v106_v24 = vmul.f32 0.5, %v105_v23 }
  0x60   :  { %v107_v25 = vsub.f32 1.5, %v106_v24 }
  0x62   :  { %v108_v26 = vmul.f32 %v163_v21, %v107_v25 }
  0x64   :  { %v109_v28 = vmul.f32 %v108_v26, %v102_v19 }
  0x66   :  { %v111_v29 = vsel %vm110_vm7, %v102_v19, %v109_v28 }
  0x67   :  { %v114_v30 = vsel %vm112_vm8, %v113_v27, %v111_v29 }
  0x68   :  { %v115_v31 = vmul.f32 0.5, %v114_v30 }
  0x6a   :  { %150 = vst.msk [vmem:[%s265_s1 + $0x1] ss:$8 sm:$0xf] %vm210_vm6, %v115_v31 }
  0x6b   :  { %151 = vst.msk [vmem:[%s265_s1 + $0x1] ss:$8 sm:$0x30] %vm210_vm6, %v115_v31 }

// kernel: _lambda_.2
= control target key start
LH: loop header
LB: loop body
LE: loop exit
PB: predicated region body
PF: predicated region fallthrough
CT: control target
= control target key end

     0   :  { %v377_v0 = vmov 0   ;;  %vm337_vm0 = vcmask 1040384   ;;  %s757_s0 = inlined_call_operand.vmem [shape: f32[16,1], index: 0, kind: input, shape index: {}]   ;;  %s758_s6 = inlined_call_operand.vmem [shape: f32[128,128], index: 6, kind: input, shape index: {}]   ;;  %s759_s5 = inlined_call_operand.vmem [shape: f32[256,128], index: 5, kind: input, shape index: {}]   ;;  %s760_s1 = inlined_call_operand.vmem [shape: f32[16,1], index: 1, kind: input, shape index: {}]   ;;  %s761_s4 = inlined_call_operand.vmem [shape: f32[16,128], index: 4, kind: input, shape index: {}]   ;;  %s762_s2 = inlined_call_operand.vmem [shape: f32[16,256], index: 2, kind: input, shape index: {}]   ;;  %s763_s3 = inlined_call_operand.vmem [shape: f32[16,256], index: 3, kind: input, shape index: {}]   ;;  %s764_s7 = inlined_call_operand.vmem [shape: f32[1,128], index: 7, kind: input, shape index: {}]   ;;  %s765_s8 = inlined_call_operand.vmem [shape: f32[128,256], index: 8, kind: input, shape index: {}]   ;;  %s766_s9 = inlined_call_operand.vmem [shape: f32[1,256], index: 9, kind: input, shape index: {}]   ;;  %s767_s10 = inlined_call_operand.vmem [shape: f32[16,256], index: 10, kind: output, shape index: {0}]   ;;  %s768_s11 = inlined_call_operand.vmem [shape: f32[1,256], index: 11, kind: output, shape index: {1}]  }
   0x1   :  { %371 = vset.pattern.permute.xlu1 %v377_v0  ;;  %370 = vset.pattern.permute.xlu0 %v377_v0  ;;  %v42_v1 = vld [vmem:[%s757_s0 + $0x8] sm:$0xff]  ;;  %v41_v2 = vld [vmem:[%s757_s0] sm:$0xff]  ;;  %v130_v3 = vld [vmem:[%s758_s6 + $0x78] sm:$0xff] }
   0x2   :  { %50 = vperm.xlu1 %371, %v42_v1   ;;  %45 = vperm.xlu0 %370, %v41_v2   ;;  %v96_v4 = vld [vmem:[%s759_s5 + $0x78] sm:$0xff]  ;;  %v129_v6 = vld [vmem:[%s758_s6 + $0x70] sm:$0xff]  ;;  %v128_v9 = vld [vmem:[%s758_s6 + $0x68] sm:$0xff] }
   0x3   :  { %131 = vmatpush.msra.mxu0 %v130_v3  ;;  %154 = vmatpush.msra.mxu1 %v96_v4  ;;  %v112_v5 = vld [vmem:[%s759_s5 + $0xf8] sm:$0xff]  ;;  %v95_v7 = vld [vmem:[%s759_s5 + $0x70] sm:$0xff]  ;;  %v94_v10 = vld [vmem:[%s759_s5 + $0x68] sm:$0xff] }
   0x4   :  { %177 = vmatpush.msra.mxu2 %v112_v5  ;;  %v111_v8 = vld [vmem:[%s759_s5 + $0xf0] sm:$0xff]  ;;  %v110_v11 = vld [vmem:[%s759_s5 + $0xe8] sm:$0xff]  ;;  %v127_v12 = vld [vmem:[%s758_s6 + $0x60] sm:$0xff] }
   0x5   :  { %132 = vmatpush.msra.mxu0 %v129_v6  ;;  %155 = vmatpush.msra.mxu1 %v95_v7  ;;  %v93_v13 = vld [vmem:[%s759_s5 + $0x60] sm:$0xff]  ;;  %v58_v14 = vld [vmem:[%s760_s1 + $0x8] sm:$0xff]  ;;  %v126_v17 = vld [vmem:[%s758_s6 + $0x58] sm:$0xff] }
   0x6   :  { %178 = vmatpush.msra.mxu2 %v111_v8  ;;  %v57_v15 = vld [vmem:[%s760_s1] sm:$0xff]  ;;  %v92_v18 = vld [vmem:[%s759_s5 + $0x58] sm:$0xff]  ;;  %v125_v20 = vld [vmem:[%s758_s6 + $0x50] sm:$0xff] }
   0x7   :  { %133 = vmatpush.msra.mxu0 %v128_v9  ;;  %156 = vmatpush.msra.mxu1 %v94_v10  ;;  %v109_v16 = vld [vmem:[%s759_s5 + $0xe0] sm:$0xff]  ;;  %v108_v19 = vld [vmem:[%s759_s5 + $0xd8] sm:$0xff]  ;;  %v91_v21 = vld [vmem:[%s759_s5 + $0x50] sm:$0xff] }
   0x8   :  { %179 = vmatpush.msra.mxu2 %v110_v11  ;;  %v107_v22 = vld [vmem:[%s759_s5 + $0xd0] sm:$0xff]  ;;  %v124_v23 = vld [vmem:[%s758_s6 + $0x48] sm:$0xff]  ;;  %v123_v26 = vld [vmem:[%s758_s6 + $0x40] sm:$0xff] }
   0x9   :  { %134 = vmatpush.msra.mxu0 %v127_v12  ;;  %157 = vmatpush.msra.mxu1 %v93_v13  ;;  %v90_v24 = vld [vmem:[%s759_s5 + $0x48] sm:$0xff]  ;;  %v89_v27 = vld [vmem:[%s759_s5 + $0x40] sm:$0xff]  ;;  %v122_v29 = vld [vmem:[%s758_s6 + $0x38] sm:$0xff] }
   0xa   :  { %70 = vperm.xlu1 %371, %v58_v14   ;;  %65 = vperm.xlu0 %370, %v57_v15   ;;  %v106_v25 = vld [vmem:[%s759_s5 + $0xc8] sm:$0xff]  ;;  %v105_v28 = vld [vmem:[%s759_s5 + $0xc0] sm:$0xff]  ;;  %v88_v30 = vld [vmem:[%s759_s5 + $0x38] sm:$0xff] }
   0xb   :  { %180 = vmatpush.msra.mxu2 %v109_v16  ;;  %135 = vmatpush.msra.mxu0 %v126_v17  ;;  %v104_v31 = vld [vmem:[%s759_s5 + $0xb8] sm:$0xff]  ;;  %v121_v32 = vld [vmem:[%s758_s6 + $0x30] sm:$0xff]  ;;  %v120_v35 = vld [vmem:[%s758_s6 + $0x28] sm:$0xff] }
   0xc   :  { %158 = vmatpush.msra.mxu1 %v92_v18  ;;  %v87_v33 = vld [vmem:[%s759_s5 + $0x30] sm:$0xff]  ;;  %v86_v36 = vld [vmem:[%s759_s5 + $0x28] sm:$0xff]  ;;  %v119_v38 = vld [vmem:[%s758_s6 + $0x20] sm:$0xff] }
   0xd   :  { %181 = vmatpush.msra.mxu2 %v108_v19  ;;  %136 = vmatpush.msra.mxu0 %v125_v20  ;;  %v103_v34 = vld [vmem:[%s759_s5 + $0xb0] sm:$0xff]  ;;  %v102_v37 = vld [vmem:[%s759_s5 + $0xa8] sm:$0xff]  ;;  %v85_v39 = vld [vmem:[%s759_s5 + $0x20] sm:$0xff] }
   0xe   :  { %159 = vmatpush.msra.mxu1 %v91_v21  ;;  %v101_v40 = vld [vmem:[%s759_s5 + $0xa0] sm:$0xff]  ;;  %v118_v41 = vld [vmem:[%s758_s6 + $0x18] sm:$0xff]  ;;  %v117_v44 = vld [vmem:[%s758_s6 + $0x10] sm:$0xff] }
   0xf   :  { %182 = vmatpush.msra.mxu2 %v107_v22  ;;  %137 = vmatpush.msra.mxu0 %v124_v23  ;;  %v84_v42 = vld [vmem:[%s759_s5 + $0x18] sm:$0xff]  ;;  %v83_v45 = vld [vmem:[%s759_s5 + $0x10] sm:$0xff]  ;;  %v116_v47 = vld [vmem:[%s758_s6 + $0x8] sm:$0xff] }
  0x10   :  { %160 = vmatpush.msra.mxu1 %v90_v24  ;;  %v100_v43 = vld [vmem:[%s759_s5 + $0x98] sm:$0xff]  ;;  %v99_v46 = vld [vmem:[%s759_s5 + $0x90] sm:$0xff]  ;;  %v82_v48 = vld [vmem:[%s759_s5 + $0x8] sm:$0xff] }
  0x11   :  { %183 = vmatpush.msra.mxu2 %v106_v25  ;;  %138 = vmatpush.msra.mxu0 %v123_v26  ;;  %v98_v49 = vld [vmem:[%s759_s5 + $0x88] sm:$0xff]  ;;  %v115_v50 = vld [vmem:[%s758_s6] sm:$0xff]  ;;  %v621_v2 = vld [vmem:[%s762_s2 + $0x10] sm:$0xff] }
  0x12   :  { %161 = vmatpush.msra.mxu1 %v89_v27  ;;  %v81_v51 = vld [vmem:[%s759_s5] sm:$0xff]  ;;  %v114_v54 = vld [vmem:[%s761_s4 + $0x8] sm:$0xff]  ;;  %v626_v3 = vld [vmem:[%s762_s2 + $0x18] sm:$0xff] }
  0x13   :  { %184 = vmatpush.msra.mxu2 %v105_v28  ;;  %139 = vmatpush.msra.mxu0 %v122_v29  ;;  %v97_v52 = vld [vmem:[%s759_s5 + $0x80] sm:$0xff]  ;;  %v608_v58 = vld [vmem:[%s762_s2 + $0x8] sm:$0xff]  ;;  %v61_v6 = vld [vmem:[%s763_s3 + $0x10] sm:$0xff] }
  0x14   :  { %162 = vmatpush.msra.mxu1 %v88_v30  ;;  %v113_v53 = vld [vmem:[%s761_s4] sm:$0xff]  ;;  %v60_v60 = vld [vmem:[%s763_s3 + $0x8] sm:$0xff]  ;;  %v62_v7 = vld [vmem:[%s763_s3 + $0x18] sm:$0xff] }
  0x15   :  { %185 = vmatpush.msra.mxu2 %v104_v31  ;;  %140 = vmatpush.msra.mxu0 %v121_v32  ;;  %v603_v57 = vld [vmem:[%s762_s2] sm:$0xff]  ;;  %v254_v15 = vld [vmem:[%s765_s8 + $0xf0] sm:$0xff]  ;;  %v255_v16 = vld [vmem:[%s765_s8 + $0xf8] sm:$0xff] }
  0x16   :  { %163 = vmatpush.msra.mxu1 %v87_v33  ;;  %v59_v59 = vld [vmem:[%s763_s3] sm:$0xff]  ;;  %262 = vmatpush.msra.mxu3 %v254_v15  ;;  %v253_v18 = vld [vmem:[%s765_s8 + $0xe8] sm:$0xff]  ;;  %v250_v19 = vld [vmem:[%s765_s8 + $0xd0] sm:$0xff] }
  0x17   :  { %186 = vmatpush.msra.mxu2 %v103_v34  ;;  %141 = vmatpush.msra.mxu0 %v120_v35  ;;  %v252_v17 = vld [vmem:[%s765_s8 + $0xe0] sm:$0xff]  ;;  %v251_v20 = vld [vmem:[%s765_s8 + $0xd8] sm:$0xff]  ;;  %v249_v22 = vld [vmem:[%s765_s8 + $0xc8] sm:$0xff] }
  0x18   :  { %164 = vmatpush.msra.mxu1 %v86_v36  ;;  %263 = vmatpush.msra.mxu3 %v252_v17  ;;  %v248_v21 = vld [vmem:[%s765_s8 + $0xc0] sm:$0xff]  ;;  %v246_v23 = vld [vmem:[%s765_s8 + $0xb0] sm:$0xff]  ;;  %v247_v24 = vld [vmem:[%s765_s8 + $0xb8] sm:$0xff] }
  0x19   :  { %187 = vmatpush.msra.mxu2 %v102_v37  ;;  %142 = vmatpush.msra.mxu0 %v119_v38  ;;  %v244_v25 = vld [vmem:[%s765_s8 + $0xa0] sm:$0xff]  ;;  %v245_v26 = vld [vmem:[%s765_s8 + $0xa8] sm:$0xff]  ;;  %v242_v27 = vld [vmem:[%s765_s8 + $0x90] sm:$0xff] }
  0x1a   :  { %165 = vmatpush.msra.mxu1 %v85_v39  ;;  %264 = vmatpush.msra.mxu3 %v250_v19  ;;  %v243_v28 = vld [vmem:[%s765_s8 + $0x98] sm:$0xff]  ;;  %v240_v29 = vld [vmem:[%s765_s8 + $0x80] sm:$0xff]  ;;  %v241_v30 = vld [vmem:[%s765_s8 + $0x88] sm:$0xff] }
  0x1b   :  { %188 = vmatpush.msra.mxu2 %v101_v40  ;;  %143 = vmatpush.msra.mxu0 %v118_v41  ;;  %v238_v31 = vld [vmem:[%s765_s8 + $0x70] sm:$0xff]  ;;  %v239_v32 = vld [vmem:[%s765_s8 + $0x78] sm:$0xff]  ;;  %v236_v33 = vld [vmem:[%s765_s8 + $0x60] sm:$0xff] }
  0x1c   :  { %166 = vmatpush.msra.mxu1 %v84_v42  ;;  %265 = vmatpush.msra.mxu3 %v248_v21  ;;  %v237_v34 = vld [vmem:[%s765_s8 + $0x68] sm:$0xff]  ;;  %v234_v35 = vld [vmem:[%s765_s8 + $0x50] sm:$0xff]  ;;  %v235_v36 = vld [vmem:[%s765_s8 + $0x58] sm:$0xff] }
  0x1d   :  { %189 = vmatpush.msra.mxu2 %v100_v43  ;;  %144 = vmatpush.msra.mxu0 %v117_v44  ;;  %v232_v37 = vld [vmem:[%s765_s8 + $0x40] sm:$0xff]  ;;  %v233_v38 = vld [vmem:[%s765_s8 + $0x48] sm:$0xff]  ;;  %v230_v39 = vld [vmem:[%s765_s8 + $0x30] sm:$0xff] }
  0x1e   :  { %167 = vmatpush.msra.mxu1 %v83_v45  ;;  %266 = vmatpush.msra.mxu3 %v246_v23  ;;  %v231_v40 = vld [vmem:[%s765_s8 + $0x38] sm:$0xff]  ;;  %v228_v41 = vld [vmem:[%s765_s8 + $0x20] sm:$0xff]  ;;  %v229_v42 = vld [vmem:[%s765_s8 + $0x28] sm:$0xff] }
  0x1f   :  { %190 = vmatpush.msra.mxu2 %v99_v46  ;;  %145 = vmatpush.msra.mxu0 %v116_v47  ;;  %v226_v43 = vld [vmem:[%s765_s8 + $0x10] sm:$0xff]  ;;  %v227_v44 = vld [vmem:[%s765_s8 + $0x18] sm:$0xff]  ;;  %v224_v45 = vld [vmem:[%s765_s8] sm:$0xff] }
  0x20   :  { %168 = vmatpush.msra.mxu1 %v82_v48  ;;  %267 = vmatpush.msra.mxu3 %v244_v25  ;;  %v225_v46 = vld [vmem:[%s765_s8 + $0x8] sm:$0xff] }
  0x21   :  { %191 = vmatpush.msra.mxu2 %v98_v49  ;;  %146 = vmatpush.msra.mxu0 %v115_v50  ;;  %v372_v50 = vld [vmem:[%s764_s7] ss:$0 sm:$0xff] }
  0x22   :  { %169 = vmatpush.msra.mxu1 %v81_v51  ;;  %147 = vmatmul.f32.vlgmr.msra.gmra.mxu0 %v113_v53 }
  0x23   :  { %192 = vmatpush.msra.mxu2 %v97_v52  ;;  %285 = vmatpush.msrb.mxu0 %v255_v16 }
  0x24   :  { %353 = vmatpush.msrb.mxu1 %v255_v16  ;;  %268 = vmatpush.msra.mxu3 %v242_v27 }
  0x25   :  { %286 = vmatpush.msrb.mxu0 %v253_v18 }
  0x26   :  { %354 = vmatpush.msrb.mxu1 %v253_v18  ;;  %269 = vmatpush.msra.mxu3 %v240_v29  ;;  %v256_v18 = vld [vmem:[%s766_s9] sm:$0x3] }
  0x27   :  { %287 = vmatpush.msrb.mxu0 %v251_v20  ;;  %v259_v19 = vperm.slane %v256_v18, 1 }
  0x28   :  { %355 = vmatpush.msrb.mxu1 %v251_v20  ;;  %270 = vmatpush.msra.mxu3 %v238_v31 }
  0x29   :  { %288 = vmatpush.msrb.mxu0 %v249_v22 }
  0x2a   :  { %150 = vmatmul.f32.gmra.mxu0 %v114_v54  ;;  %356 = vmatpush.msrb.mxu1 %v249_v22  ;;  %v258_v22 = vperm.slane %v256_v18, 0 }
  0x2b   :  { %289 = vmatpush.msrb.mxu0 %v247_v24  ;;  %271 = vmatpush.msra.mxu3 %v236_v33 }
  0x2c   :  { %357 = vmatpush.msrb.mxu1 %v247_v24 }
  0x2d   :  { %290 = vmatpush.msrb.mxu0 %v245_v26  ;;  %272 = vmatpush.msra.mxu3 %v234_v35 }
  0x2e   :  { %358 = vmatpush.msrb.mxu1 %v245_v26 }
  0x2f   :  { %291 = vmatpush.msrb.mxu0 %v243_v28  ;;  %273 = vmatpush.msra.mxu3 %v232_v37 }
  0x30   :  { %359 = vmatpush.msrb.mxu1 %v243_v28 }
  0x31   :  { %292 = vmatpush.msrb.mxu0 %v241_v30  ;;  %274 = vmatpush.msra.mxu3 %v230_v39 }
  0x32   :  { %360 = vmatpush.msrb.mxu1 %v241_v30 }
  0x33   :  { %293 = vmatpush.msrb.mxu0 %v239_v32  ;;  %275 = vmatpush.msra.mxu3 %v228_v41 }
  0x34   :  { %361 = vmatpush.msrb.mxu1 %v239_v32 }
  0x35   :  { %294 = vmatpush.msrb.mxu0 %v237_v34  ;;  %276 = vmatpush.msra.mxu3 %v226_v43 }
  0x36   :  { %362 = vmatpush.msrb.mxu1 %v237_v34 }
  0x37   :  { %295 = vmatpush.msrb.mxu0 %v235_v36  ;;  %277 = vmatpush.msra.mxu3 %v224_v45 }
  0x38   :  { %363 = vmatpush.msrb.mxu1 %v235_v36 }
  0x39   :  { %296 = vmatpush.msrb.mxu0 %v233_v38 }
  0x3a   :  { %364 = vmatpush.msrb.mxu1 %v233_v38 }
  0x3b   :  { %297 = vmatpush.msrb.mxu0 %v231_v40 }
  0x3c   :  { %365 = vmatpush.msrb.mxu1 %v231_v40 }
  0x3d   :  { %298 = vmatpush.msrb.mxu0 %v229_v42 }
  0x3e   :  { %366 = vmatpush.msrb.mxu1 %v229_v42 }
  0x3f   :  { %299 = vmatpush.msrb.mxu0 %v227_v44 }
  0x40   :  { %367 = vmatpush.msrb.mxu1 %v227_v44 }
  0x41   :  { %300 = vmatpush.msrb.mxu0 %v225_v46 }
  0x42   :  { %368 = vmatpush.msrb.mxu1 %v225_v46  ;;  %v340_v46 = vlaneseq }
  0x44   :  { %vm342_vm1 = vcmp.lt.s32.totalorder %v340_v46, 256 }
  0x74   :  { %v46_v55 = vpop.permute.xlu0 %45  ;;  %v51_v56 = vpop.permute.xlu1 %50 }
  0x75   :  { %v53_v62 = vmul.f32 %v46_v55, %v603_v57  ;;  %v54_v63 = vmul.f32 %v46_v55, %v608_v58  ;;  %v55_v9 = vmul.f32 %v51_v56, %v621_v2  ;;  %v56_v10 = vmul.f32 %v51_v56, %v626_v3 }
  0x7c   :  { %v66_v61 = vpop.permute.xlu0 %65  ;;  %v71_v8 = vpop.permute.xlu1 %70 }
  0x7d   :  { %v73_v0 = vmul.f32 %v66_v61, %v59_v59  ;;  %v74_v1 = vmul.f32 %v66_v61, %v60_v60  ;;  %v75_v11 = vmul.f32 %v71_v8, %v61_v6  ;;  %v76_v12 = vmul.f32 %v71_v8, %v62_v7 }
  0x7f   :  { %v77_v4 = vadd.f32 %v73_v0, %v53_v62  ;;  %v78_v5 = vadd.f32 %v74_v1, %v54_v63  ;;  %v79_v13 = vadd.f32 %v75_v11, %v55_v9  ;;  %v80_v14 = vadd.f32 %v76_v12, %v56_v10 }
  0x81   :  { %170 = vmatmul.f32.vlgmr.msra.gmra.mxu1 %v77_v4  ;;  %193 = vmatmul.f32.vlgmr.msra.gmra.mxu2 %v78_v5 }
  0x89   :  { %173 = vmatmul.f32.gmra.mxu1 %v79_v13  ;;  %196 = vmatmul.f32.gmra.mxu2 %v80_v14 }
  0x9f   :  { %v148_v47 = vpop.f32.mrf.mxu0 }
  0xa7   :  { %v151_v54 = vpop.f32.mrf.mxu0 }
  0xfe   :  { %v171_v48 = vpop.f32.mrf.mxu1 }
  0xff   :  { %v172_v49 = vadd.f32 %v171_v48, %v148_v47 }
 0x104   :  { %v194_v51 = vpop.f32.mrf.mxu2 }
 0x105   :  { %v195_v52 = vadd.f32 %v194_v51, %v172_v49 }
 0x106   :  { %v174_v55 = vpop.f32.mrf.mxu1 }
 0x107   :  { %v204_v53 = vadd.f32 %v372_v50, %v195_v52  ;;  %v175_v59 = vadd.f32 %v174_v55, %v151_v54 }
 0x109   :  { %v206_v56 = vmul.f32 %v204_v53, %v204_v53 }
 0x10b   :  { %v208_v60 = vmul.f32 %v206_v56, %v204_v53 }
 0x10c   :  { %v197_v61 = vpop.f32.mrf.mxu2 }
 0x10d   :  { %v198_v62 = vadd.f32 %v197_v61, %v175_v59  ;;  %v210_v63 = vmul.f32 0.044715, %v208_v60 }
 0x10f   :  { %v205_v0 = vadd.f32 %v372_v50, %v198_v62  ;;  %v212_v1 = vadd.f32 %v210_v63, %v204_v53 }
 0x111   :  { %v207_v4 = vmul.f32 %v205_v0, %v205_v0  ;;  %v214_v5 = vmul.f32 0.7978846, %v212_v1 }
 0x113   :  { %373 = vtanh.f32 %v214_v5  ;;  %v209_v6 = vmul.f32 %v207_v4, %v205_v0 }
 0x115   :  { %v211_v7 = vmul.f32 0.044715, %v209_v6 }
 0x117   :  { %v213_v8 = vadd.f32 %v211_v7, %v205_v0 }
 0x119   :  { %v374_v9 = vpop.eup %373  ;;  %v215_v10 = vmul.f32 0.7978846, %v213_v8 }
 0x11a   :  { %v218_v11 = vadd.f32 1.0, %v374_v9 }
 0x11b   :  { %375 = vtanh.f32 %v215_v10 }
 0x11c   :  { %v220_v12 = vmul.f32 0.5, %v218_v11 }
 0x11e   :  { %v222_v13 = vmul.f32 %v220_v12, %v204_v53 }
 0x120   :  { %278 = vmatmul.f32.vlgmr.msra.gmra.mxu3 %v222_v13  ;;  %301 = vmatmul.f32.vlgmr.msrb.gmra.mxu0 %v222_v13 }
 0x121   :  { %v376_v14 = vpop.eup %375 }
 0x122   :  { %v219_v15 = vadd.f32 1.0, %v376_v14 }
 0x124   :  { %v221_v16 = vmul.f32 0.5, %v219_v15 }
 0x126   :  { %v223_v17 = vmul.f32 %v221_v16, %v205_v0 }
 0x128   :  { %281 = vmatmul.f32.gmra.mxu3 %v223_v17  ;;  %304 = vmatmul.f32.vlgmr.msrb.gmra.mxu1 %v223_v17 }
 0x19d   :  { %v302_v20 = vpop.f32.mrf.mxu0 }
 0x19e   :  { %v303_v21 = vadd.f32 %v302_v20, %v259_v19 }
 0x1a0   :  { %309 = vst [vmem:[%s767_s10 + $0x8] sm:$0xff] %v303_v21  ;;  %v313_v26 = vsub.f32 %v303_v21, %v608_v58 }
 0x1a2   :  { %v317_v29 = vmul.f32 %v313_v26, %v313_v26 }
 0x1a3   :  { %v279_v23 = vpop.f32.mrf.mxu3 }
 0x1a4   :  { %v280_v24 = vadd.f32 %v279_v23, %v258_v22 }
 0x1a5   :  { %v305_v25 = vpop.f32.mrf.mxu1 }
 0x1a6   :  { %308 = vst [vmem:[%s767_s10] sm:$0xff] %v280_v24  ;;  %v306_v27 = vadd.f32 %v305_v25, %v259_v19  ;;  %v312_v32 = vsub.f32 %v280_v24, %v603_v57 }
 0x1a8   :  { %311 = vst [vmem:[%s767_s10 + $0x18] sm:$0xff] %v306_v27  ;;  %v315_v28 = vsub.f32 %v306_v27, %v626_v3  ;;  %v316_v36 = vmul.f32 %v312_v32, %v312_v32 }
 0x1aa   :  { %v319_v30 = vmul.f32 %v315_v28, %v315_v28 }
 0x1ab   :  { %v282_v31 = vpop.f32.mrf.mxu3 }
 0x1ac   :  { %v327_v33 = vadd.f32 %v319_v30, %v317_v29  ;;  %v283_v34 = vadd.f32 %v282_v31, %v258_v22 }
 0x1ae   :  { %v328_v35 = vrot.slane %v327_v33, 4  ;;  %310 = vst [vmem:[%s767_s10 + $0x10] sm:$0xff] %v283_v34  ;;  %v314_v58 = vsub.f32 %v283_v34, %v621_v2 }
 0x1b0   :  { %v329_v37 = vadd.f32 %v328_v35, %v327_v33  ;;  %v318_v38 = vmul.f32 %v314_v58, %v314_v58 }
 0x1b2   :  { %v330_v39 = vrot.slane %v329_v37, 2  ;;  %v320_v40 = vadd.f32 %v318_v38, %v316_v36 }
 0x1b4   :  { %v331_v3 = vadd.f32 %v330_v39, %v329_v37  ;;  %v321_v41 = vrot.slane %v320_v40, 4 }
 0x1b6   :  { %v332_v42 = vrot.slane %v331_v3, 1  ;;  %v322_v43 = vadd.f32 %v321_v41, %v320_v40 }
 0x1b8   :  { %v323_v44 = vrot.slane %v322_v43, 2  ;;  %v333_v57 = vadd.f32 %v332_v42, %v331_v3 }
 0x1ba   :  { %v324_v45 = vadd.f32 %v323_v44, %v322_v43  ;;  %v336_v48 = vrot.slane %v333_v57, 7 }
 0x1bc   :  { %v325_v47 = vrot.slane %v324_v45, 1 }
 0x1be   :  { %v326_v49 = vadd.f32 %v325_v47, %v324_v45 }
 0x1c0   :  { %v338_v50 = vsel %vm337_vm0, %v326_v49, %v336_v48 }
 0x1c1   :  { %344 = vst.msk [vmem:[%s768_s11] sm:$0x3] %vm342_vm1, %v338_v50 }

</bundles_post_ra>
